<compile_context>
chip_gen: v6e
topology: v6e:2x2x1
jax: 0.10.0
libtpu: 0.0.40
codegen_flags: <defaults>
</compile_context>

<pallas_src>
import functools

import jax
import jax.numpy as jnp
from jax.experimental import pallas as pl
from jax.experimental.pallas import tpu as pltpu


@functools.partial(jax.jit, static_argnames=("p",))
def simple_conv_forward(x_nchw, weight, *, p=1):
    """Conv2d(c1, c2, 1, 1, p, bias=False)(x).permute(0, 2, 3, 1).

    x_nchw: (N, C1, H, W) float32.  weight: (C2, C1, 1, 1) PyTorch Conv2d layout.
    Returns NHWC output (N, H + 2p, W + 2p, C2).
    """
    N, C1, H, W = x_nchw.shape
    C2 = weight.shape[0]
    Ho, Wo = H + 2 * p, W + 2 * p
    K = Wo * C2  # lane width of one flattened, padded NHWC output row

    # Wrapper-side (negligible cost) expansion matrix:
    #   M[c, w, (w + p)*C2 + o] = weight[o, c]; zeros elsewhere (incl. the padded border cols).
    w2 = weight.reshape(C2, C1).astype(x_nchw.dtype)               # (C2, C1)
    eye = jnp.eye(W, dtype=x_nchw.dtype)                           # (W, W)
    core = eye[None, :, :, None] * w2.T[:, None, None, :]          # (C1, W, W, C2)
    core = core.reshape(C1, W, W * C2)
    m = jnp.pad(core, ((0, 0), (0, 0), (p * C2, p * C2)))          # (C1, W, K)

    def kernel(x_ref, m_ref, o_ref):
        # x_ref: (1, C1, H, W)  one NCHW image
        # m_ref: (C1, W, K)     expansion matrices (same block every step -> stays resident)
        # o_ref: (1, Ho, K)     flattened, padded NHWC plane for this image
        acc = jnp.zeros((H, K), jnp.float32)
        for c in range(C1):  # static unroll over the small, fixed channel count
            acc = acc + jnp.dot(x_ref[0, c], m_ref[c],
                                preferred_element_type=jnp.float32)
        if p:
            zrow = jnp.zeros((p, K), o_ref.dtype)
            o_ref[0, 0:p, :] = zrow            # top border rows (lane-dense)
            o_ref[0, p + H:Ho, :] = zrow       # bottom border rows (lane-dense)
        # Interior rows: left/right zero padding is already baked into acc via M.
        o_ref[0, p:p + H, :] = acc.astype(o_ref.dtype)

    out_flat = pl.pallas_call(
        kernel,
        out_shape=jax.ShapeDtypeStruct((N, Ho, K), x_nchw.dtype),
        grid_spec=pltpu.PrefetchScalarGridSpec(
            num_scalar_prefetch=0,
            grid=(N,),
            in_specs=[
                pl.BlockSpec((1, C1, H, W), lambda n: (n, 0, 0, 0)),
                pl.BlockSpec((C1, W, K), lambda n: (0, 0, 0)),
            ],
            out_specs=pl.BlockSpec((1, Ho, K), lambda n: (n, 0, 0)),
        ),
        compiler_params=pltpu.CompilerParams(
            dimension_semantics=("parallel",),
        ),
    )(x_nchw, m)

    # Free contiguous reshape back to NHWC.
    return out_flat.reshape(N, Ho, Wo, C2)


if __name__ == "__main__":
    key = jax.random.PRNGKey(0)
    kx, kw = jax.random.split(key)

    N, C1, C2, H, W = 2, 4, 8, 16, 16
    x = jax.random.normal(kx, (N, C1, H, W), dtype=jnp.float32)
    # Deterministic weight, PyTorch Conv2d weight shape (c2, c1//g, k, k) = (8, 4, 1, 1).
    bound = 1.0 / (C1 ** 0.5)
    weight = jax.random.uniform(kw, (C2, C1, 1, 1), dtype=jnp.float32,
                                minval=-bound, maxval=bound)

    out = simple_conv_forward(x, weight, p=1)
    out = jax.block_until_ready(out)

    # Reference (plain JAX): 1x1 conv == channel matmul, then zero pad, then NHWC.
    ref_core = jnp.einsum("nchw,oc->nhwo", x, weight.reshape(C2, C1))
    ref = jnp.pad(ref_core, ((0, 0), (1, 1), (1, 1), (0, 0)))
    assert out.shape == (N, H + 2, W + 2, C2), out.shape
    assert jnp.allclose(out, ref, atol=1e-5, rtol=1e-5)

    print("KERNEL_OK")
</pallas_src>

<mosaic_0001>
module attributes {stable_mosaic.version = 11 : i64} {
  func.func @kernel(%arg0: i32, %arg1: memref<1x4x16x16xf32, #tpu.memory_space<vmem>>, %arg2: memref<4x16x144xf32, #tpu.memory_space<vmem>>, %arg3: memref<1x18x144xf32, #tpu.memory_space<vmem>>) attributes {dimension_semantics = [#tpu.dimension_semantics<parallel>], iteration_bounds = array<i64: 2>, scalar_prefetch = 0 : i64, scratch_operands = 0 : i64, tpu.core_type = #tpu.core_type<tc>, window_params = [{transform_indices = @transform_0, window_bounds = array<i64: 1, 4, 16, 16>}, {pipeline_mode = #tpu.pipeline_mode<synchronous>, transform_indices = @transform_1, window_bounds = array<i64: 4, 16, 144>}, {transform_indices = @transform_2, window_bounds = array<i64: 1, 18, 144>}]} {
    %cst = arith.constant 0.000000e+00 : f32
    %0 = vector.broadcast %cst : f32 to vector<16x144xf32>
    %c0 = arith.constant 0 : index
    %c0_0 = arith.constant 0 : index
    %c0_1 = arith.constant 0 : index
    %c0_2 = arith.constant 0 : index
    %1 = vector.load %arg1[%c0, %c0_0, %c0_1, %c0_2] : memref<1x4x16x16xf32, #tpu.memory_space<vmem>>, vector<1x1x16x16xf32>
    %2 = vector.shape_cast %1 : vector<1x1x16x16xf32> to vector<16x16xf32>
    %c0_3 = arith.constant 0 : index
    %c0_4 = arith.constant 0 : index
    %c0_5 = arith.constant 0 : index
    %3 = vector.load %arg2[%c0_3, %c0_4, %c0_5] : memref<4x16x144xf32, #tpu.memory_space<vmem>>, vector<1x16x144xf32>
    %4 = vector.shape_cast %3 : vector<1x16x144xf32> to vector<16x144xf32>
    %cst_6 = arith.constant dense<0.000000e+00> : vector<16x144xf32>
    %5 = tpu.matmul %2, %4, %cst_6 {dimension_numbers = #tpu.dot_dimension_numbers<[1], [0], [0], [1], [0, 0, 1, 1], [], []>} : vector<16x16xf32>, vector<16x144xf32>, vector<16x144xf32> -> vector<16x144xf32>
    %6 = arith.addf %0, %5 : vector<16x144xf32>
    %c0_7 = arith.constant 0 : index
    %c1 = arith.constant 1 : index
    %c0_8 = arith.constant 0 : index
    %c0_9 = arith.constant 0 : index
    %7 = vector.load %arg1[%c0_7, %c1, %c0_8, %c0_9] : memref<1x4x16x16xf32, #tpu.memory_space<vmem>>, vector<1x1x16x16xf32>
    %8 = vector.shape_cast %7 : vector<1x1x16x16xf32> to vector<16x16xf32>
    %c1_10 = arith.constant 1 : index
    %c0_11 = arith.constant 0 : index
    %c0_12 = arith.constant 0 : index
    %9 = vector.load %arg2[%c1_10, %c0_11, %c0_12] : memref<4x16x144xf32, #tpu.memory_space<vmem>>, vector<1x16x144xf32>
    %10 = vector.shape_cast %9 : vector<1x16x144xf32> to vector<16x144xf32>
    %cst_13 = arith.constant dense<0.000000e+00> : vector<16x144xf32>
    %11 = tpu.matmul %8, %10, %cst_13 {dimension_numbers = #tpu.dot_dimension_numbers<[1], [0], [0], [1], [0, 0, 1, 1], [], []>} : vector<16x16xf32>, vector<16x144xf32>, vector<16x144xf32> -> vector<16x144xf32>
    %12 = arith.addf %6, %11 : vector<16x144xf32>
    %c0_14 = arith.constant 0 : index
    %c2 = arith.constant 2 : index
    %c0_15 = arith.constant 0 : index
    %c0_16 = arith.constant 0 : index
    %13 = vector.load %arg1[%c0_14, %c2, %c0_15, %c0_16] : memref<1x4x16x16xf32, #tpu.memory_space<vmem>>, vector<1x1x16x16xf32>
    %14 = vector.shape_cast %13 : vector<1x1x16x16xf32> to vector<16x16xf32>
    %c2_17 = arith.constant 2 : index
    %c0_18 = arith.constant 0 : index
    %c0_19 = arith.constant 0 : index
    %15 = vector.load %arg2[%c2_17, %c0_18, %c0_19] : memref<4x16x144xf32, #tpu.memory_space<vmem>>, vector<1x16x144xf32>
    %16 = vector.shape_cast %15 : vector<1x16x144xf32> to vector<16x144xf32>
    %cst_20 = arith.constant dense<0.000000e+00> : vector<16x144xf32>
    %17 = tpu.matmul %14, %16, %cst_20 {dimension_numbers = #tpu.dot_dimension_numbers<[1], [0], [0], [1], [0, 0, 1, 1], [], []>} : vector<16x16xf32>, vector<16x144xf32>, vector<16x144xf32> -> vector<16x144xf32>
    %18 = arith.addf %12, %17 : vector<16x144xf32>
    %c0_21 = arith.constant 0 : index
    %c3 = arith.constant 3 : index
    %c0_22 = arith.constant 0 : index
    %c0_23 = arith.constant 0 : index
    %19 = vector.load %arg1[%c0_21, %c3, %c0_22, %c0_23] : memref<1x4x16x16xf32, #tpu.memory_space<vmem>>, vector<1x1x16x16xf32>
    %20 = vector.shape_cast %19 : vector<1x1x16x16xf32> to vector<16x16xf32>
    %c3_24 = arith.constant 3 : index
    %c0_25 = arith.constant 0 : index
    %c0_26 = arith.constant 0 : index
    %21 = vector.load %arg2[%c3_24, %c0_25, %c0_26] : memref<4x16x144xf32, #tpu.memory_space<vmem>>, vector<1x16x144xf32>
    %22 = vector.shape_cast %21 : vector<1x16x144xf32> to vector<16x144xf32>
    %cst_27 = arith.constant dense<0.000000e+00> : vector<16x144xf32>
    %23 = tpu.matmul %20, %22, %cst_27 {dimension_numbers = #tpu.dot_dimension_numbers<[1], [0], [0], [1], [0, 0, 1, 1], [], []>} : vector<16x16xf32>, vector<16x144xf32>, vector<16x144xf32> -> vector<16x144xf32>
    %24 = arith.addf %18, %23 : vector<16x144xf32>
    %cst_28 = arith.constant 0.000000e+00 : f32
    %25 = vector.broadcast %cst_28 : f32 to vector<1x144xf32>
    %c0_29 = arith.constant 0 : index
    %c0_30 = arith.constant 0 : index
    %c0_31 = arith.constant 0 : index
    %26 = vector.load %arg3[%c0_29, %c0_30, %c0_31] : memref<1x18x144xf32, #tpu.memory_space<vmem>>, vector<1x1x144xf32>
    %27 = vector.shape_cast %26 : vector<1x1x144xf32> to vector<1x144xf32>
    %28 = vector.shape_cast %25 : vector<1x144xf32> to vector<1x1x144xf32>
    tpu.vector_store %arg3[%c0_29, %c0_30, %c0_31], %28 {strides = array<i32>} : memref<1x18x144xf32, #tpu.memory_space<vmem>>, vector<1x1x144xf32>,
    %c0_32 = arith.constant 0 : index
    %c17 = arith.constant 17 : index
    %c0_33 = arith.constant 0 : index
    %29 = vector.load %arg3[%c0_32, %c17, %c0_33] : memref<1x18x144xf32, #tpu.memory_space<vmem>>, vector<1x1x144xf32>
    %30 = vector.shape_cast %29 : vector<1x1x144xf32> to vector<1x144xf32>
    %31 = vector.shape_cast %25 : vector<1x144xf32> to vector<1x1x144xf32>
    tpu.vector_store %arg3[%c0_32, %c17, %c0_33], %31 {strides = array<i32>} : memref<1x18x144xf32, #tpu.memory_space<vmem>>, vector<1x1x144xf32>,
    %c0_34 = arith.constant 0 : index
    %c1_35 = arith.constant 1 : index
    %c0_36 = arith.constant 0 : index
    %32 = vector.load %arg3[%c0_34, %c1_35, %c0_36] : memref<1x18x144xf32, #tpu.memory_space<vmem>>, vector<1x16x144xf32>
    %33 = vector.shape_cast %32 : vector<1x16x144xf32> to vector<16x144xf32>
    %34 = vector.shape_cast %24 : vector<16x144xf32> to vector<1x16x144xf32>
    tpu.vector_store %arg3[%c0_34, %c1_35, %c0_36], %34 {strides = array<i32>} : memref<1x18x144xf32, #tpu.memory_space<vmem>>, vector<1x16x144xf32>,
    return
  }
  func.func @transform_0(%arg0: i32) -> (i32, i32, i32, i32) {
    %c0_i32 = arith.constant 0 : i32
    %c0_i32_0 = arith.constant 0 : i32
    %c0_i32_1 = arith.constant 0 : i32
    %c0_i32_2 = arith.constant 0 : i32
    return %arg0, %c0_i32, %c0_i32_0, %c0_i32_1 : i32, i32, i32, i32
  }
  func.func @transform_1(%arg0: i32) -> (i32, i32, i32) {
    %c0_i32 = arith.constant 0 : i32
    %c0_i32_0 = arith.constant 0 : i32
    %c0_i32_1 = arith.constant 0 : i32
    %c0_i32_2 = arith.constant 0 : i32
    return %c0_i32, %c0_i32_0, %c0_i32_1 : i32, i32, i32
  }
  func.func @transform_2(%arg0: i32) -> (i32, i32, i32) {
    %c0_i32 = arith.constant 0 : i32
    %c0_i32_0 = arith.constant 0 : i32
    %c0_i32_1 = arith.constant 0 : i32
    return %arg0, %c0_i32, %c0_i32_0 : i32, i32, i32
  }
}

</mosaic_0001>

<bundles_post_ra>
// kernel: simple_conv_forward.1
= control target key start
LH: loop header
LB: loop body
LE: loop exit
PB: predicated region body
PF: predicated region fallthrough
CT: control target
= control target key end

     0   :  { %s676_s9 = smov 0   ;;  %s774_s0 = inlined_call_operand.vmem [shape: f32[2,4,16,16], index: 0, kind: input, shape index: {}]   ;;  %s775_s1 = inlined_call_operand.vmem [shape: f32[4,16,144], index: 1, kind: input, shape index: {}]   ;;  %s776_s2 = inlined_call_operand.vmem [shape: f32[2,18,144], index: 2, kind: output, shape index: {}]  }
   0x1 LB: > { %s604_s10 = sadd.s32 4294967295, %s658_s9   ;;  %p608_p0 = scmp.ge.s32.totalorder %s658_s9, 1  ;;  %s658_s9 = sphi %s676_s9, %s12_s9  }
   0x2   : > { %p112_p1 = scmp.lt.s32.totalorder %s658_s9, 3 }
   0x4   : > { %p113_p2 = pnand %p608_p0, %p112_p1 }
   0x5   : > { %p134_p3 = scmp.lt.s32.totalorder (!%p113_p2), %s604_s10, 1 }
   0x6   : > { %116 = sbr.rel (%p113_p2) target bundleno = 233 (0xe9), region = 28 }
   0xb   : > { %v617_v0 = vld [vmem:[%s775_s1 + $0x38] sm:$0xff]  ;;  %v616_v1 = vld [vmem:[%s775_s1 + $0x30] sm:$0xff]  ;;  %v615_v3 = vld [vmem:[%s775_s1 + $0x28] sm:$0xff]  ;;  %s778_s10 = smov (!%p134_p3, %s604_s10), 1  ;;  %v660_v10 = vmov 0.0   ;;  %vm158_vm0 = vcmask 130048   ;;  %v515_v25 = vlaneseq }
   0xc   : > { %v149_v2 = vld [vmem:[%s775_s1 + $0x18] sm:$0xff]  ;;  %193 = vmatprep.subr.mxu0 %v617_v0  ;;  %v148_v4 = vld [vmem:[%s775_s1 + $0x10] sm:$0xff]  ;;  %v614_v5 = vld [vmem:[%s775_s1 + $0x20] sm:$0xff]  ;;  %229 = vmatprep.mubr.f32.mxu0 %v660_v10  ;;  %s641_s3 = sshll.u32 %s778_s10, 6  ;;  %s642_s21 = smul.u32 48, %s778_s10  ;;  %vm542_vm2 = vcmask 130049  }
   0xd   : > { %276 = vmatprep.subr.mxu1 %v149_v2  ;;  %194 = vmatpush1.msra.mxu0 %v616_v1  ;;  %v147_v6 = vld [vmem:[%s775_s1 + $0x8] sm:$0xff]  ;;  %v146_v7 = vld [vmem:[%s775_s1] sm:$0xff]  ;;  %v627_v8 = vld [vmem:[%s775_s1 + $0x58] sm:$0xff]  ;;  %s720_s6 = scalar_lea.vmem %s774_s0, %s641_s3  ;;  %vm517_vm1 = vcmp.lt.s32.totalorder %v515_v25, 144  ;;  %vm528_vm3 = vcmask 1040384   ;;  %vm547_vm4 = vcmask 122880  }
   0xe   : > { %277 = vmatpush1.msra.mxu1 %v148_v4  ;;  %195 = vmatprep.subr.mxu0 %v615_v3  ;;  %v635_v9 = vld [vmem:[%s775_s1 + $0x78] sm:$0xff]  ;;  %v626_v11 = vld [vmem:[%s775_s1 + $0x50] sm:$0xff]  ;;  %v144_v14 = vld [vmem:[%s720_s6] sm:$0xff]  ;;  %s760_s24 = scalar_lea.vmem %s776_s2, %s642_s21 }
   0xf   : > { %278 = vmatprep.subr.mxu1 %v147_v6  ;;  %196 = vmatpush1.msra.mxu0 %v614_v5  ;;  %v634_v12 = vld [vmem:[%s775_s1 + $0x70] sm:$0xff]  ;;  %v625_v15 = vld [vmem:[%s775_s1 + $0x48] sm:$0xff]  ;;  %v613_v17 = vld [vmem:[%s720_s6 + $0x18] sm:$0xff]  ;;  %519 = vst.msk [vmem:[%s760_s24] ss:$8 sm:$0x3] %vm517_vm1, %v660_v10 }
  0x10   : > { %279 = vmatpush1.msra.mxu1 %v146_v7  ;;  %312 = vmatprep.mubr.f32.mxu1 %v660_v10  ;;  %v612_v13 = vld [vmem:[%s720_s6 + $0x10] sm:$0xff]  ;;  %v633_v16 = vld [vmem:[%s775_s1 + $0x68] sm:$0xff]  ;;  %v624_v19 = vld [vmem:[%s775_s1 + $0x40] sm:$0xff]  ;;  %638 = vst.msk [vmem:[%s760_s24 + $0x21] ss:$8 sm:$0x3] %vm517_vm1, %v660_v10 }
  0x11   : > { %367 = vmatprep.subr.mxu0 %v627_v8  ;;  %462 = vmatprep.subr.mxu1 %v635_v9  ;;  %v145_v18 = vld [vmem:[%s720_s6 + $0x8] sm:$0xff]  ;;  %v632_v20 = vld [vmem:[%s775_s1 + $0x60] sm:$0xff]  ;;  %v630_v22 = vld [vmem:[%s720_s6 + $0x30] sm:$0xff] }
  0x12   : > { %618 = vmatmul.mubr.msk.f32.vlgmr.msra.gmra.mxu0 %vm158_vm0, %v612_v13  ;;  %620 = vmatmul.mubr.msk.f32.vlgmr.msra.gmra.mxu1 %vm158_vm0, %v144_v14  ;;  %v622_v21 = vld [vmem:[%s720_s6 + $0x20] sm:$0xff]  ;;  %v623_v23 = vld [vmem:[%s720_s6 + $0x28] sm:$0xff]  ;;  %v631_v24 = vld [vmem:[%s720_s6 + $0x38] sm:$0xff] }
  0x13   : > { %368 = vmatpush1.msra.mxu0 %v626_v11  ;;  %463 = vmatpush1.msra.mxu1 %v634_v12 }
  0x14   : > { %235 = vmatprep.mubr.f32.mxu0 %v660_v10  ;;  %318 = vmatprep.mubr.f32.mxu1 %v660_v10 }
  0x15   : > { %369 = vmatprep.subr.mxu0 %v625_v15  ;;  %464 = vmatprep.subr.mxu1 %v633_v16 }
  0x16   : > { %619 = vmatmul.mubr.msk.f32.gmra.mxu0 %vm158_vm0, %v613_v17  ;;  %621 = vmatmul.mubr.msk.f32.gmra.mxu1 %vm158_vm0, %v145_v18 }
  0x17   : > { %370 = vmatpush1.msra.mxu0 %v624_v19  ;;  %465 = vmatpush1.msra.mxu1 %v632_v20 }
  0x18   : > { %403 = vmatprep.mubr.f32.mxu0 %v660_v10  ;;  %498 = vmatprep.mubr.f32.mxu1 %v660_v10 }
  0x1a   : > { %628 = vmatmul.mubr.msk.f32.vlgmr.msra.gmra.mxu0 %vm158_vm0, %v622_v21  ;;  %636 = vmatmul.mubr.msk.f32.vlgmr.msra.gmra.mxu1 %vm158_vm0, %v630_v22 }
  0x1b   : > { %409 = vmatprep.mubr.f32.mxu0 %v660_v10  ;;  %504 = vmatprep.mubr.f32.mxu1 %v660_v10 }
  0x1e   : > { %629 = vmatmul.mubr.msk.f32.gmra.mxu0 %vm158_vm0, %v623_v23  ;;  %637 = vmatmul.mubr.msk.f32.gmra.mxu1 %vm158_vm0, %v631_v24 }
  0xd2   : > { %v231_v26 = vpop.f32.mrf.mxu0  ;;  %v314_v27 = vpop.f32.mrf.mxu1 }
  0xd3   : > { %v315_v34 = vadd.f32 %v314_v27, %v231_v26 }
  0xd4   : > { %v233_v28 = vpop.f32.mrf.mxu0  ;;  %v316_v29 = vpop.f32.mrf.mxu1 }
  0xd5   : > { %v317_v37 = vadd.f32 %v316_v29, %v233_v28 }
  0xd6   : > { %v237_v30 = vpop.f32.mrf.mxu0  ;;  %v320_v31 = vpop.f32.mrf.mxu1 }
  0xd7   : > { %v321_v41 = vadd.f32 %v320_v31, %v237_v30 }
  0xd8   : > { %v239_v32 = vpop.f32.mrf.mxu0  ;;  %v322_v33 = vpop.f32.mrf.mxu1 }
  0xd9   : > { %v323_v46 = vadd.f32 %v322_v33, %v239_v32 }
  0xda   : > { %v405_v35 = vpop.f32.mrf.mxu0  ;;  %v500_v36 = vpop.f32.mrf.mxu1 }
  0xdb   : > { %v416_v38 = vadd.f32 %v405_v35, %v315_v34 }
  0xdc   : > { %v407_v39 = vpop.f32.mrf.mxu0  ;;  %v502_v40 = vpop.f32.mrf.mxu1 }
  0xdd   : > { %v511_v42 = vadd.f32 %v500_v36, %v416_v38  ;;  %v417_v43 = vadd.f32 %v407_v39, %v317_v37 }
  0xde   : > { %v411_v44 = vpop.f32.mrf.mxu0  ;;  %v506_v45 = vpop.f32.mrf.mxu1 }
  0xdf   : > { %v529_v47 = vrot.slane %v511_v42, 7  ;;  %v512_v48 = vadd.f32 %v502_v40, %v417_v43  ;;  %v418_v49 = vadd.f32 %v411_v44, %v321_v41 }
  0xe0   : > { %v413_v50 = vpop.f32.mrf.mxu0  ;;  %v508_v54 = vpop.f32.mrf.mxu1 }
  0xe1   : > { %541 = vst [vmem:[%s760_s24] sm:$0xfe] %v529_v47  ;;  %v530_v51 = vrot.slane %v512_v48, 7  ;;  %v513_v52 = vadd.f32 %v506_v45, %v418_v49  ;;  %v419_v53 = vadd.f32 %v413_v50, %v323_v46 }
  0xe3   : > { %543 = vst.msk [vmem:[%s760_s24 + $0x8] sm:$0xfe] %vm542_vm2, %v530_v51  ;;  %v531_v55 = vrot.slane %v513_v52, 7  ;;  %v514_v56 = vadd.f32 %v508_v54, %v419_v53 }
  0xe5   : > { %v532_v57 = vsel %vm528_vm3, %v529_v47, %v531_v55  ;;  %546 = vst [vmem:[%s760_s24 + $0x20] sm:$0x1] %v531_v55  ;;  %v533_v58 = vrot.slane %v514_v56, 7 }
  0xe6   : > { %544 = vst [vmem:[%s760_s24 + $0x10] sm:$0xff] %v532_v57 }
  0xe7   : > { %v534_v59 = vsel %vm528_vm3, %v530_v51, %v533_v58  ;;  %548 = vst.msk [vmem:[%s760_s24 + $0x28] sm:$0x1] %vm547_vm4, %v533_v58 }
  0xe8   : > { %545 = vst.msk [vmem:[%s760_s24 + $0x18] sm:$0xff] %vm158_vm0, %v534_v59 }
  0xe9 PF: > { %s12_s9 = sadd.s32 1, %s658_s9  }
  0xea   : > { %p9_p4 = scmp.ge.s32.totalorder %s12_s9, 4  }
  0xec   :  { %11 = sbr.rel (!%p9_p4) target bundleno = 1 (0x1), region = 65 }

</bundles_post_ra>
